<compile_context>
chip_gen: v6e
topology: v6e:2x2x1
jax: 0.10.0
libtpu: 0.0.40
codegen_flags: <defaults>
</compile_context>

<pallas_src>
import functools
import math

import jax
import jax.numpy as jnp
from jax.experimental import pallas as pl
from jax.experimental.pallas import tpu as pltpu

_TARGET_BLOCK_BYTES = 4 << 20          # ~4 MiB per array per pipeline buffer
_VMEM_LIMIT_BYTES = 32 << 20           # >= 24 MiB footprint; legal on v5e/v6e/v7x
_SPLIT_MIN_BYTES = 256 << 10           # split into >=2 grid steps above this size
_FALLBACK_FOOTPRINT_BYTES = 48 << 20   # bail out if a single block would be huge


def _li_kernel_static(x_ref, s_ref, out_ref, *, decay):
    # decay is a compile-time Python float; multiply in f32, cast back, add.
    s = s_ref[...]
    prod = (s.astype(jnp.float32) * jnp.float32(decay)).astype(s.dtype)
    out_ref[...] = prod + x_ref[...]


def _li_kernel_dynamic(decay_ref, x_ref, s_ref, out_ref):
    # decay_ref: (1,) float32 scalar in SMEM.
    s = s_ref[...]
    prod = (s.astype(jnp.float32) * decay_ref[0]).astype(s.dtype)
    out_ref[...] = prod + x_ref[...]


def _jnp_fallback(input_tensor, state, decay_rate):
    if isinstance(decay_rate, (int, float)):
        decay = jnp.float32(decay_rate)
    else:
        decay = jnp.asarray(decay_rate, dtype=jnp.float32)
    prod = (state.astype(jnp.float32) * decay).astype(state.dtype)
    out = prod + input_tensor
    return out, out


def _as_2d(a, total, shape):
    """Copy-free 2-D view: lane-dense when possible, trailing-dim otherwise."""
    for lane in (1024, 512, 256, 128):
        if total % lane == 0:
            return a.reshape(total // lane, lane)
    if len(shape) >= 2:
        return a.reshape(-1, shape[-1])
    return a.reshape(1, total)


def _choose_tile_rows(rows, row_bytes, pack, total_bytes):
    # Largest row tile (multiple of sublane packing) under the VMEM target.
    max_rows = max(pack, (_TARGET_BLOCK_BYTES // row_bytes) // pack * pack)
    if rows > max_rows:
        return max_rows
    # Whole slab fits in one block: for medium inputs still split the row axis
    # so v7x's two TensorCores both get work (near no-op on v5e/v6e).
    if rows >= 2 * pack and total_bytes >= _SPLIT_MIN_BYTES:
        half = -(-rows // 2)
        half = -(-half // pack) * pack
        return min(rows, half)
    return rows


def fast_li_cell(input_tensor, state, decay_rate, *, min_pallas_elements=1024):
    """JAX / Pallas equivalent of FastLICell.forward.

    input_tensor, state: same shape and dtype.
    decay_rate: python float/int (baked into the kernel) or a scalar array
      (routed through an SMEM scalar, computed in float32 like PyTorch).
    Returns (new_state, output); both equal state * decay_rate + input_tensor.

    Note: when used in a recurrent loop, donate the state buffer
    (jax.jit(..., donate_argnums=...)) so input_output_aliases avoids a copy.
    """
    assert input_tensor.shape == state.shape
    assert input_tensor.dtype == state.dtype
    orig_shape = tuple(input_tensor.shape)
    dtype = input_tensor.dtype
    itemsize = jnp.dtype(dtype).itemsize
    total = math.prod(orig_shape) if orig_shape else 1

    # Tiny tensors: fixed pallas_call overhead dominates -> let XLA fuse it.
    if total < min_pallas_elements:
        return _jnp_fallback(input_tensor, state, decay_rate)

    x2d = _as_2d(input_tensor, total, orig_shape)
    s2d = _as_2d(state, total, orig_shape)
    rows, width = x2d.shape

    pack = max(8, 32 // itemsize)           # sublane packing: 8 f32 / 16 bf16 / 32 i8
    padded_width = -(-width // 128) * 128   # VMEM lanes round up to 128
    row_bytes = padded_width * itemsize
    tile_rows = _choose_tile_rows(rows, row_bytes, pack, total * itemsize)

    # 3 arrays x 2 pipeline buffers per block; bail out to plain XLA if even the
    # minimal block would blow scoped VMEM (pathological ragged trailing dims).
    if 6 * tile_rows * row_bytes > _FALLBACK_FOOTPRINT_BYTES:
        # TODO(synk): tile along a non-128-multiple trailing dim instead of
        # falling back for this (rare) case.
        return _jnp_fallback(input_tensor, state, decay_rate)

    grid = (pl.cdiv(rows, tile_rows),)
    data_spec = pl.BlockSpec((tile_rows, width), lambda i: (i, 0))

    cost = pl.CostEstimate(
        flops=2 * total, transcendentals=0, bytes_accessed=3 * total * itemsize
    )
    cparams = pltpu.CompilerParams(
        dimension_semantics=("parallel",),
        vmem_limit_bytes=_VMEM_LIMIT_BYTES,
    )

    if isinstance(decay_rate, (int, float)):
        kernel = functools.partial(_li_kernel_static, decay=float(decay_rate))
        in_specs = [data_spec, data_spec]
        operands = (x2d, s2d)
        aliases = {1: 0}    # state buffer -> output buffer
    else:
        decay = jnp.asarray(decay_rate, dtype=jnp.float32).reshape((1,))
        kernel = _li_kernel_dynamic
        in_specs = [pl.BlockSpec(memory_space=pltpu.SMEM), data_spec, data_spec]
        operands = (decay, x2d, s2d)
        aliases = {2: 0}    # state buffer -> output buffer

    out2d = pl.pallas_call(
        kernel,
        out_shape=jax.ShapeDtypeStruct((rows, width), dtype),
        grid_spec=pl.GridSpec(grid=grid, in_specs=in_specs, out_specs=data_spec),
        compiler_params=cparams,
        cost_estimate=cost,
        input_output_aliases=aliases,
    )(*operands)

    new_state = out2d.reshape(orig_shape)
    # PyTorch returns the mutated state and a clone; values are identical and
    # JAX arrays are immutable, so returning the same array twice is exact.
    return new_state, new_state


if __name__ == "__main__":
    key = jax.random.PRNGKey(0)
    ok = True

    # 1) Small NCHW feature map, static python-float decay (baked-in path).
    k1, k2, key = jax.random.split(key, 3)
    x = jax.random.normal(k1, (2, 4, 16, 16), dtype=jnp.float32)
    state = jax.random.normal(k2, (2, 4, 16, 16), dtype=jnp.float32)
    ref = state * jnp.float32(0.9) + x
    new_state, out = fast_li_cell(x, state, 0.9)
    jax.block_until_ready(new_state)
    jax.block_until_ready(out)
    ok &= bool(jnp.allclose(new_state, ref, atol=1e-6, rtol=1e-6))
    ok &= bool(jnp.allclose(out, ref, atol=1e-6, rtol=1e-6))

    # 2) Ragged size (total % 128 != 0) -> copy-free trailing-dim path, with a
    #    scalar-array decay (SMEM path), matching torch.tensor(decay_rate).
    k1, k2, key = jax.random.split(key, 3)
    x2 = jax.random.normal(k1, (3, 5, 33, 17), dtype=jnp.float32)
    s2 = jax.random.normal(k2, (3, 5, 33, 17), dtype=jnp.float32)
    d2 = jnp.asarray(0.75, dtype=jnp.float32)
    ref2 = s2 * d2 + x2
    ns2, o2 = fast_li_cell(x2, s2, d2)
    jax.block_until_ready(ns2)
    ok &= bool(jnp.allclose(ns2, ref2, atol=1e-6, rtol=1e-6))
    ok &= bool(jnp.allclose(o2, ref2, atol=1e-6, rtol=1e-6))

    # 3) Size large enough to exercise the tiled grid (>= 2 grid steps,
    #    partial last row block), lane-dense path, static decay.
    k1, k2, key = jax.random.split(key, 3)
    x3 = jax.random.normal(k1, (2, 16, 128, 130), dtype=jnp.float32)
    s3 = jax.random.normal(k2, (2, 16, 128, 130), dtype=jnp.float32)
    ref3 = s3 * jnp.float32(0.5) + x3
    ns3, o3 = fast_li_cell(x3, s3, 0.5)
    jax.block_until_ready(ns3)
    ok &= bool(jnp.allclose(ns3, ref3, atol=1e-6, rtol=1e-6))
    ok &= bool(jnp.allclose(o3, ref3, atol=1e-6, rtol=1e-6))

    # 4) bf16 path (dtype-scaled tile, 16-row sublane packing), static decay.
    k1, k2, key = jax.random.split(key, 3)
    x4 = jax.random.normal(k1, (4, 8, 64, 64), dtype=jnp.bfloat16)
    s4 = jax.random.normal(k2, (4, 8, 64, 64), dtype=jnp.bfloat16)
    ref4 = (s4.astype(jnp.float32) * jnp.float32(0.6)).astype(jnp.bfloat16) + x4
    ns4, o4 = fast_li_cell(x4, s4, 0.6)
    jax.block_until_ready(ns4)
    ok &= bool(jnp.allclose(ns4.astype(jnp.float32), ref4.astype(jnp.float32),
                            atol=2e-2, rtol=2e-2))
    ok &= bool(jnp.allclose(o4.astype(jnp.float32), ref4.astype(jnp.float32),
                            atol=2e-2, rtol=2e-2))

    assert ok
    print("KERNEL_OK")
</pallas_src>

<mosaic_0001>
module attributes {stable_mosaic.version = 11 : i64} {
  func.func @_li_kernel_static(%arg0: i32, %arg1: memref<2x1024xf32, #tpu.memory_space<vmem>>, %arg2: memref<2x1024xf32, #tpu.memory_space<vmem>>, %arg3: memref<2x1024xf32, #tpu.memory_space<vmem>>) attributes {dimension_semantics = [#tpu.dimension_semantics<parallel>], iteration_bounds = array<i64: 1>, scalar_prefetch = 0 : i64, scratch_operands = 0 : i64, tpu.core_type = #tpu.core_type<tc>, window_params = [{transform_indices = @transform_0, window_bounds = array<i64: 2, 1024>}, {transform_indices = @transform_1, window_bounds = array<i64: 2, 1024>}, {transform_indices = @transform_2, window_bounds = array<i64: 2, 1024>}]} {
    %c0 = arith.constant 0 : index
    %c0_0 = arith.constant 0 : index
    %0 = vector.load %arg2[%c0, %c0_0] : memref<2x1024xf32, #tpu.memory_space<vmem>>, vector<2x1024xf32>
    %cst = arith.constant 0.899999976 : f32
    %1 = vector.broadcast %cst : f32 to vector<2x1024xf32>
    %2 = arith.mulf %0, %1 : vector<2x1024xf32>
    %c0_1 = arith.constant 0 : index
    %c0_2 = arith.constant 0 : index
    %3 = vector.load %arg1[%c0_1, %c0_2] : memref<2x1024xf32, #tpu.memory_space<vmem>>, vector<2x1024xf32>
    %4 = arith.addf %2, %3 : vector<2x1024xf32>
    %c0_3 = arith.constant 0 : index
    %c0_4 = arith.constant 0 : index
    %5 = vector.load %arg3[%c0_3, %c0_4] : memref<2x1024xf32, #tpu.memory_space<vmem>>, vector<2x1024xf32>
    tpu.vector_store %arg3[%c0_3, %c0_4], %4 {strides = array<i32>} : memref<2x1024xf32, #tpu.memory_space<vmem>>, vector<2x1024xf32>,
    return
  }
  func.func @transform_0(%arg0: i32) -> (i32, i32) {
    %c0_i32 = arith.constant 0 : i32
    %c0_i32_0 = arith.constant 0 : i32
    return %arg0, %c0_i32 : i32, i32
  }
  func.func @transform_1(%arg0: i32) -> (i32, i32) {
    %c0_i32 = arith.constant 0 : i32
    %c0_i32_0 = arith.constant 0 : i32
    return %arg0, %c0_i32 : i32, i32
  }
  func.func @transform_2(%arg0: i32) -> (i32, i32) {
    %c0_i32 = arith.constant 0 : i32
    %c0_i32_0 = arith.constant 0 : i32
    return %arg0, %c0_i32 : i32, i32
  }
}

</mosaic_0001>

<bundles_post_ra>
// kernel: tpu_custom_call.1
= control target key start
LH: loop header
LB: loop body
LE: loop exit
PB: predicated region body
PF: predicated region fallthrough
CT: control target
= control target key end

     0   :  { %7 = vsyncpa [#allocation3], 0  ;;  %s124_s0 = inlined_call_operand.vmem [shape: f32[2,1024], index: 0, kind: input, shape index: {}]   ;;  %s125_s1 = inlined_call_operand.hbm [shape: f32[2,1024], index: 1, kind: input, shape index: {}, may-alias: {1,2}]   ;;  %s126_s2 = inlined_call_operand.hbm [shape: f32[2,1024], index: 2, kind: output, shape index: {}, may-alias: {1,2}]  }
   0x1   :  { %8 = vsyncpa [#allocation4], 0  ;;  %s95_s9 = smov [#allocation2]  }
   0x2   :  { %s17_s10 = sshll.u32 %s95_s9, 4  ;;  %s18_s10 = int_to_ptr.vmem [resolvable:$true] %s17_s10 }
   0x3   :  { %s59_s11 = scalar_lea.vmem %s18_s10, 256  ;;  %p64_p1 = scmp.lt.s32.totalorder %s18_s10, %s18_s10 }
   0x4   :  { %p60_p0 = scmp.ne.s32.totalorder %s18_s10, %s59_s11  ;;  %p65_p2 = scmp.lt.s32.totalorder %s59_s11, %s59_s11 }
   0x6   :  { %p66_p3 = por %p65_p2, %p64_p1 }
   0x8   :  { %p67_p4 = pnand %p66_p3, %p60_p0 }
   0xa   :  { %70 = shalt.err (!%p67_p4)
}
   0xb   :  { %20 = dma.hbm_to_vmem [thread:$0]  %s125_s1, 256, %s18_s10, [#allocation3]  }
   0xc   :  { %91 = dma.done.wait [#allocation3], 256  }
   0xd   :  { %92 = vsyncadd [#allocation3], 4294967040  ;;  %v24_v0 = vld [vmem:[#allocation2] sm:$0xff]  ;;  %v25_v2 = vld [vmem:[#allocation2 + $0x8] sm:$0xff]  ;;  %s96_s16 = smov [#allocation5]  }
   0xe   :  { %v28_v1 = vld [vmem:[%s124_s0] sm:$0xff]  ;;  %s40_s17 = sshll.u32 %s96_s16, 4  ;;  %v26_v3 = vmul.f32 0.9, %v24_v0  ;;  %v27_v4 = vmul.f32 0.9, %v25_v2  ;;  %s41_s17 = int_to_ptr.vmem [resolvable:$true] %s40_s17 }
   0xf   :  { %v29_v5 = vld [vmem:[%s124_s0 + $0x8] sm:$0xff]  ;;  %s71_s1 = scalar_lea.vmem %s41_s17, 256  ;;  %p76_p6 = scmp.lt.s32.totalorder %s41_s17, %s41_s17 }
  0x10   :  { %v30_v6 = vadd.f32 %v28_v1, %v26_v3  ;;  %v31_v7 = vadd.f32 %v29_v5, %v27_v4  ;;  %p72_p5 = scmp.ne.s32.totalorder %s41_s17, %s71_s1  ;;  %p77_p7 = scmp.lt.s32.totalorder %s71_s1, %s71_s1 }
  0x12   :  { %32 = vst [vmem:[#allocation5] sm:$0xff] %v30_v6  ;;  %33 = vst [vmem:[#allocation5 + $0x8] sm:$0xff] %v31_v7  ;;  %p78_p8 = por %p77_p7, %p76_p6 }
  0x14   :  { %p79_p9 = pnand %p78_p8, %p72_p5 }
  0x16   :  { %82 = shalt.err (!%p79_p9)
}
  0x17   :  { %43 = dma.vmem_to_hbm [thread:$0]  %s41_s17, 256, %s126_s2, [#allocation4]  }
  0x18   :  { %93 = dma.done.wait [#allocation4], 256  }
  0x19   :  { %94 = vsyncadd [#allocation4], 4294967040 }
  0x1a   :  { %47 = vsyncpa [#allocation3], 1 }
  0x1b   :  { %48 = vsyncpa [#allocation4], 1 }

</bundles_post_ra>
